<compile_context>
chip_gen: v6e
topology: v6e:2x2x1
jax: 0.10.0
libtpu: 0.0.40
codegen_flags: <defaults>
</compile_context>

<pallas_src>
import math

import jax
import jax.numpy as jnp
import numpy as np
from jax.experimental import pallas as pl
from jax.experimental.pallas import tpu as pltpu


def make_divisible(v, divisor, min_value=None):
    if min_value is None:
        min_value = divisor
    new_v = max(min_value, int(v + divisor / 2) // divisor * divisor)
    if new_v < 0.9 * v:
        new_v += divisor
    return new_v


# ----------------------------- Pallas kernel ----------------------------------
def se_kernel(x_ref, w1_ref, b1_ref, w2_ref, b2_ref, o_ref):
    # x_ref : (Bt, C, HW)  block of batch rows; channels -> sublanes, spatial -> lanes
    # w1_ref: (Cr, C)   b1_ref: (Cr, 1)   fc1, PyTorch (out, in) layout
    # w2_ref: (C, Cr)   b2_ref: (C, 1)    fc2
    # o_ref : (Bt, C, HW)
    Bt, C, HW = x_ref.shape
    inv_hw = 1.0 / float(HW)          # derived from the spatial (lane) extent, not C
    unroll = Bt <= 8                  # short loops fully unrolled for LLO visibility
    lane_ids = jax.lax.broadcasted_iota(jnp.int32, (C, Bt), 1)

    # ---- Pass 1: per-row global average pool (lane-axis reduction). ------------
    # Each pooled column (C, 1) keeps channels on sublanes; it is scattered into
    # lane b of a (C, Bt) accumulator with a VPU select (no relayout, no dynamic
    # lane stores).  Row slabs are consumed immediately -> flat vreg pressure.
    def pool_row(b, acc):
        xr = x_ref[b].astype(jnp.float32)                         # (C, HW)
        col = jnp.sum(xr, axis=1, keepdims=True) * inv_hw         # (C, 1)
        return jnp.where(lane_ids == b, col, acc)                 # place in lane b

    pooled = jax.lax.fori_loop(0, Bt, pool_row,
                               jnp.zeros((C, Bt), jnp.float32), unroll=unroll)

    # ---- Gate MLP (f32): ONE batched matmul pair per block (N = Bt). -----------
    z1 = jnp.dot(w1_ref[...], pooled,
                 preferred_element_type=jnp.float32) + b1_ref[...]   # (Cr, Bt)
    z1 = jnp.maximum(z1, 0.0)                                        # ReLU
    z2 = jnp.dot(w2_ref[...], z1,
                 preferred_element_type=jnp.float32) + b2_ref[...]   # (C, Bt)
    gate = jnp.clip(z2 + 3.0, 0.0, 6.0) * (1.0 / 6.0)                # HSigmoid (C, Bt)

    # ---- Pass 2: channel-wise rescale, row by row. ------------------------------
    # Gate column b is gathered with a masked lane reduction (tiny), stays (C, 1)
    # with channels on sublanes -> free broadcast over the HW lane axis.
    def scale_row(b, carry):
        g = jnp.sum(jnp.where(lane_ids == b, gate, 0.0),
                    axis=1, keepdims=True)                           # (C, 1)
        xr = x_ref[b].astype(jnp.float32)                            # (C, HW)
        o_ref[b] = (xr * g).astype(o_ref.dtype)
        return carry

    jax.lax.fori_loop(0, Bt, scale_row, 0, unroll=unroll)


# ----------------------------- tiling heuristic --------------------------------
def _pick_batch_tile(B, C, HW, itemsize):
    """Rows per grid step: big blocks on single-TC chips, >=2 steps for v7x."""
    row_bytes = max(1, C * HW * itemsize)
    # ~2 MiB x tile: double-buffered in+out => ~8 MiB VMEM, safe on v7x's 32 MiB
    # scoped default, large enough to amortize ~0.35 us/step and saturate HBM.
    bt = max(1, min(B, (2 << 20) // row_bytes))
    if B >= 2:
        bt = min(bt, (B + 1) // 2)     # keep >= 2 parallel steps for v7x's 2 TCs
    bt = min(bt, 64)                   # bound in-kernel scatter/gather cost
    while B % bt:                      # no ragged tail block
        bt -= 1
    return bt


# ----------------------------- wrapper ------------------------------------------
@jax.jit
def se_layer_forward(x_nchw, params):
    """x_nchw: (B, C, H, W), same layout/dtype as the PyTorch module input."""
    B, C, H, W = x_nchw.shape
    HW = H * W
    x3d = x_nchw.reshape(B, C, HW)          # free row-major view; HW on lanes

    w1 = params["fc1_w"]                    # (Cr, C)   PyTorch (out, in)
    b1 = params["fc1_b"].reshape(-1, 1)     # (Cr, 1)
    w2 = params["fc2_w"]                    # (C, Cr)
    b2 = params["fc2_b"].reshape(-1, 1)     # (C, 1)
    Cr = w1.shape[0]

    Bt = _pick_batch_tile(B, C, HW, x_nchw.dtype.itemsize)

    out3d = pl.pallas_call(
        se_kernel,
        out_shape=jax.ShapeDtypeStruct((B, C, HW), x_nchw.dtype),
        grid=(B // Bt,),
        in_specs=[
            pl.BlockSpec((Bt, C, HW), lambda i: (i, 0, 0)),   # x block (Bt rows)
            pl.BlockSpec((Cr, C), lambda i: (0, 0)),          # fc1 weight (resident)
            pl.BlockSpec((Cr, 1), lambda i: (0, 0)),          # fc1 bias
            pl.BlockSpec((C, Cr), lambda i: (0, 0)),          # fc2 weight
            pl.BlockSpec((C, 1), lambda i: (0, 0)),           # fc2 bias
        ],
        out_specs=pl.BlockSpec((Bt, C, HW), lambda i: (i, 0, 0)),
        compiler_params=pltpu.CompilerParams(
            dimension_semantics=("parallel",)),               # 2-TC sharding on v7x
    )(x3d, w1, b1, w2, b2)

    return out3d.reshape(B, C, H, W)


# ----------------------------- reference (plain JAX) ----------------------------
def reference_forward(x_nchw, params):
    y = jnp.mean(x_nchw.astype(jnp.float32), axis=(2, 3))              # (B, C)
    z1 = jnp.maximum(y @ params["fc1_w"].T + params["fc1_b"], 0.0)
    z2 = z1 @ params["fc2_w"].T + params["fc2_b"]
    gate = jnp.clip(z2 + 3.0, 0.0, 6.0) / 6.0                          # HSigmoid
    return (x_nchw.astype(jnp.float32) * gate[:, :, None, None]).astype(x_nchw.dtype)


# ----------------------------- parameter init -----------------------------------
def init_params(key, channel, reduction=4):
    cr = make_divisible(channel // reduction, 8)
    k1, k2, k3, k4 = jax.random.split(key, 4)
    s1 = 1.0 / math.sqrt(channel)
    s2 = 1.0 / math.sqrt(cr)
    # PyTorch nn.Linear convention: weight (out, in), y = x @ W.T + b
    fc1_w = jax.random.uniform(k1, (cr, channel), jnp.float32, -s1, s1)
    fc1_b = jax.random.uniform(k2, (cr,), jnp.float32, -s1, s1)
    fc2_w = jax.random.uniform(k3, (channel, cr), jnp.float32, -s2, s2)
    fc2_b = jax.random.uniform(k4, (channel,), jnp.float32, -s2, s2)
    return dict(fc1_w=fc1_w, fc1_b=fc1_b, fc2_w=fc2_w, fc2_b=fc2_b)


# ----------------------------- main ----------------------------------------------
if __name__ == "__main__":
    B, C, H, W = 2, 32, 16, 16          # channel=32 -> reduced dim make_divisible(8, 8)=8

    root = jax.random.PRNGKey(0)
    kx, kp = jax.random.split(root)
    x = jax.random.normal(kx, (B, C, H, W), jnp.float32)   # NCHW, like the PyTorch module
    params = init_params(kp, C)

    out = jax.block_until_ready(se_layer_forward(x, params))
    ref = jax.block_until_ready(reference_forward(x, params))

    np.testing.assert_allclose(np.asarray(out), np.asarray(ref), rtol=1e-5, atol=1e-5)
    assert out.shape == (B, C, H, W)

    print("KERNEL_OK")
</pallas_src>

<mosaic_0001>
module attributes {stable_mosaic.version = 11 : i64} {
  func.func @se_kernel(%arg0: i32, %arg1: memref<1x32x256xf32, #tpu.memory_space<vmem>>, %arg2: memref<8x32xf32, #tpu.memory_space<vmem>>, %arg3: memref<8x1xf32, #tpu.memory_space<vmem>>, %arg4: memref<32x8xf32, #tpu.memory_space<vmem>>, %arg5: memref<32x1xf32, #tpu.memory_space<vmem>>, %arg6: memref<1x32x256xf32, #tpu.memory_space<vmem>>) attributes {dimension_semantics = [#tpu.dimension_semantics<parallel>], iteration_bounds = array<i64: 2>, scalar_prefetch = 0 : i64, scratch_operands = 0 : i64, tpu.core_type = #tpu.core_type<tc>, window_params = [{transform_indices = @transform_0, window_bounds = array<i64: 1, 32, 256>}, {pipeline_mode = #tpu.pipeline_mode<synchronous>, transform_indices = @transform_1, window_bounds = array<i64: 8, 32>}, {pipeline_mode = #tpu.pipeline_mode<synchronous>, transform_indices = @transform_2, window_bounds = array<i64: 8, 1>}, {pipeline_mode = #tpu.pipeline_mode<synchronous>, transform_indices = @transform_3, window_bounds = array<i64: 32, 8>}, {pipeline_mode = #tpu.pipeline_mode<synchronous>, transform_indices = @transform_4, window_bounds = array<i64: 32, 1>}, {transform_indices = @transform_5, window_bounds = array<i64: 1, 32, 256>}]} {
    %0 = tpu.iota {dimensions = array<i32: 1>} : vector<32x1xi32>
    %cst = arith.constant 0.000000e+00 : f32
    %1 = vector.broadcast %cst : f32 to vector<32x1xf32>
    %c0_i32 = arith.constant 0 : i32
    %2 = arith.index_cast %c0_i32 : i32 to index
    %c0 = arith.constant 0 : index
    %c0_0 = arith.constant 0 : index
    %3 = vector.load %arg1[%2, %c0, %c0_0] : memref<1x32x256xf32, #tpu.memory_space<vmem>>, vector<1x32x256xf32>
    %4 = vector.shape_cast %3 : vector<1x32x256xf32> to vector<32x256xf32>
    %cst_1 = arith.constant dense<0.000000e+00> : vector<32xf32>
    %5 = vector.multi_reduction <add>, %4, %cst_1 [1] : vector<32x256xf32> to vector<32xf32>
    %6 = vector.shape_cast %5 : vector<32xf32> to vector<32x1xf32>
    %cst_2 = arith.constant 3.906250e-03 : f32
    %7 = vector.broadcast %cst_2 : f32 to vector<32x1xf32>
    %8 = arith.mulf %6, %7 : vector<32x1xf32>
    %9 = vector.broadcast %c0_i32 : i32 to vector<32x1xi32>
    %10 = arith.cmpi eq, %0, %9 : vector<32x1xi32>
    %11 = arith.select %10, %8, %1 : vector<32x1xi1>, vector<32x1xf32>
    %c1_i32 = arith.constant 1 : i32
    %c0_3 = arith.constant 0 : index
    %c0_4 = arith.constant 0 : index
    %12 = vector.load %arg2[%c0_3, %c0_4] : memref<8x32xf32, #tpu.memory_space<vmem>>, vector<8x32xf32>
    %cst_5 = arith.constant dense<0.000000e+00> : vector<8x1xf32>
    %13 = tpu.matmul %12, %11, %cst_5 {dimension_numbers = #tpu.dot_dimension_numbers<[1], [0], [0], [1], [0, 0, 1, 1], [], []>} : vector<8x32xf32>, vector<32x1xf32>, vector<8x1xf32> -> vector<8x1xf32>
    %c0_6 = arith.constant 0 : index
    %c0_7 = arith.constant 0 : index
    %14 = vector.load %arg3[%c0_6, %c0_7] : memref<8x1xf32, #tpu.memory_space<vmem>>, vector<8x1xf32>
    %15 = arith.addf %13, %14 : vector<8x1xf32>
    %cst_8 = arith.constant 0.000000e+00 : f32
    %16 = vector.broadcast %cst_8 : f32 to vector<8x1xf32>
    %17 = arith.maximumf %15, %16 : vector<8x1xf32>
    %c0_9 = arith.constant 0 : index
    %c0_10 = arith.constant 0 : index
    %18 = vector.load %arg4[%c0_9, %c0_10] : memref<32x8xf32, #tpu.memory_space<vmem>>, vector<32x8xf32>
    %cst_11 = arith.constant dense<0.000000e+00> : vector<32x1xf32>
    %19 = tpu.matmul %18, %17, %cst_11 {dimension_numbers = #tpu.dot_dimension_numbers<[1], [0], [0], [1], [0, 0, 1, 1], [], []>} : vector<32x8xf32>, vector<8x1xf32>, vector<32x1xf32> -> vector<32x1xf32>
    %c0_12 = arith.constant 0 : index
    %c0_13 = arith.constant 0 : index
    %20 = vector.load %arg5[%c0_12, %c0_13] : memref<32x1xf32, #tpu.memory_space<vmem>>, vector<32x1xf32>
    %21 = arith.addf %19, %20 : vector<32x1xf32>
    %cst_14 = arith.constant 3.000000e+00 : f32
    %22 = vector.broadcast %cst_14 : f32 to vector<32x1xf32>
    %23 = arith.addf %21, %22 : vector<32x1xf32>
    %cst_15 = arith.constant 0.000000e+00 : f32
    %cst_16 = arith.constant 6.000000e+00 : f32
    %24 = vector.broadcast %cst_15 : f32 to vector<32x1xf32>
    %25 = arith.maximumf %24, %23 : vector<32x1xf32>
    %26 = vector.broadcast %cst_16 : f32 to vector<32x1xf32>
    %27 = arith.minimumf %26, %25 : vector<32x1xf32>
    %cst_17 = arith.constant 0.166666672 : f32
    %28 = vector.broadcast %cst_17 : f32 to vector<32x1xf32>
    %29 = arith.mulf %27, %28 : vector<32x1xf32>
    %c0_i32_18 = arith.constant 0 : i32
    %30 = vector.broadcast %c0_i32_18 : i32 to vector<32x1xi32>
    %31 = arith.cmpi eq, %0, %30 : vector<32x1xi32>
    %cst_19 = arith.constant 0.000000e+00 : f32
    %32 = vector.broadcast %cst_19 : f32 to vector<32x1xf32>
    %33 = arith.select %31, %29, %32 : vector<32x1xi1>, vector<32x1xf32>
    %cst_20 = arith.constant dense<0.000000e+00> : vector<32xf32>
    %34 = vector.multi_reduction <add>, %33, %cst_20 [1] : vector<32x1xf32> to vector<32xf32>
    %35 = vector.shape_cast %34 : vector<32xf32> to vector<32x1xf32>
    %36 = arith.index_cast %c0_i32_18 : i32 to index
    %c0_21 = arith.constant 0 : index
    %c0_22 = arith.constant 0 : index
    %37 = vector.load %arg1[%36, %c0_21, %c0_22] : memref<1x32x256xf32, #tpu.memory_space<vmem>>, vector<1x32x256xf32>
    %38 = vector.shape_cast %37 : vector<1x32x256xf32> to vector<32x256xf32>
    %39 = vector.broadcast %35 : vector<32x1xf32> to vector<32x256xf32>
    %40 = arith.mulf %38, %39 : vector<32x256xf32>
    %41 = arith.index_cast %c0_i32_18 : i32 to index
    %c0_23 = arith.constant 0 : index
    %c0_24 = arith.constant 0 : index
    %42 = vector.load %arg6[%41, %c0_23, %c0_24] : memref<1x32x256xf32, #tpu.memory_space<vmem>>, vector<1x32x256xf32>
    %43 = vector.shape_cast %42 : vector<1x32x256xf32> to vector<32x256xf32>
    %44 = vector.shape_cast %40 : vector<32x256xf32> to vector<1x32x256xf32>
    tpu.vector_store %arg6[%41, %c0_23, %c0_24], %44 {strides = array<i32>} : memref<1x32x256xf32, #tpu.memory_space<vmem>>, vector<1x32x256xf32>,
    %c1_i32_25 = arith.constant 1 : i32
    return
  }
  func.func @transform_0(%arg0: i32) -> (i32, i32, i32) {
    %c0_i32 = arith.constant 0 : i32
    %c0_i32_0 = arith.constant 0 : i32
    %c0_i32_1 = arith.constant 0 : i32
    return %arg0, %c0_i32, %c0_i32_0 : i32, i32, i32
  }
  func.func @transform_1(%arg0: i32) -> (i32, i32) {
    %c0_i32 = arith.constant 0 : i32
    %c0_i32_0 = arith.constant 0 : i32
    %c0_i32_1 = arith.constant 0 : i32
    return %c0_i32, %c0_i32_0 : i32, i32
  }
  func.func @transform_2(%arg0: i32) -> (i32, i32) {
    %c0_i32 = arith.constant 0 : i32
    %c0_i32_0 = arith.constant 0 : i32
    %c0_i32_1 = arith.constant 0 : i32
    return %c0_i32, %c0_i32_0 : i32, i32
  }
  func.func @transform_3(%arg0: i32) -> (i32, i32) {
    %c0_i32 = arith.constant 0 : i32
    %c0_i32_0 = arith.constant 0 : i32
    %c0_i32_1 = arith.constant 0 : i32
    return %c0_i32, %c0_i32_0 : i32, i32
  }
  func.func @transform_4(%arg0: i32) -> (i32, i32) {
    %c0_i32 = arith.constant 0 : i32
    %c0_i32_0 = arith.constant 0 : i32
    %c0_i32_1 = arith.constant 0 : i32
    return %c0_i32, %c0_i32_0 : i32, i32
  }
  func.func @transform_5(%arg0: i32) -> (i32, i32, i32) {
    %c0_i32 = arith.constant 0 : i32
    %c0_i32_0 = arith.constant 0 : i32
    %c0_i32_1 = arith.constant 0 : i32
    return %arg0, %c0_i32, %c0_i32_0 : i32, i32, i32
  }
}

</mosaic_0001>

<bundles_post_ra>
// kernel: se_layer_forward.1
= control target key start
LH: loop header
LB: loop body
LE: loop exit
PB: predicated region body
PF: predicated region fallthrough
CT: control target
= control target key end

     0   :  { %s659_s18 = smov 0   ;;  %s764_s0 = inlined_call_operand.vmem [shape: f32[2,32,256], index: 0, kind: input, shape index: {}]   ;;  %s765_s1 = inlined_call_operand.vmem [shape: f32[8,32], index: 1, kind: input, shape index: {}]   ;;  %s766_s2 = inlined_call_operand.vmem [shape: f32[8,1], index: 2, kind: input, shape index: {}]   ;;  %s767_s3 = inlined_call_operand.vmem [shape: f32[32,8], index: 3, kind: input, shape index: {}]   ;;  %s768_s4 = inlined_call_operand.vmem [shape: f32[32,1], index: 4, kind: input, shape index: {}]   ;;  %s769_s5 = inlined_call_operand.vmem [shape: f32[2,32,256], index: 5, kind: output, shape index: {}]  }
   0x1 LB: > { %s554_s19 = sadd.s32 4294967295, %s624_s18   ;;  %p558_p0 = scmp.ge.s32.totalorder %s624_s18, 1  ;;  %s624_s18 = sphi %s659_s18, %s15_s18  }
   0x2   : > { %p187_p1 = scmp.lt.s32.totalorder %s624_s18, 3 }
   0x4   : > { %p188_p2 = pnand %p558_p0, %p187_p1 }
   0x5   : > { %p215_p3 = scmp.lt.s32.totalorder (!%p188_p2), %s554_s19, 1 }
   0x6   : > { %191 = sbr.rel (%p188_p2) target bundleno = 706 (0x2c2), region = 40 }
   0xb   : > { %s771_s19 = smov (!%p215_p3, %s554_s19), 1  ;;  %v626_v12 = vmov 0.0   ;;  %vm627_vm0 = vmmov 0   ;;  %v225_v13 = vlaneseq  ;;  %v256_v23 = vld [vmem:[%s765_s1] sm:$0xff]  ;;  %vm258_vm2 = vcmask 261120   ;;  %v334_v30 = vld [vmem:[%s767_s3 + $0x8] sm:$0xff] }
   0xc   : > { %s574_s20 = sshll.u32 %s771_s19, 6  ;;  %586 = vmatprep.subr.mxu0 %v626_v12  ;;  %594 = vmatprep.mubr.msk.f32.mxu0 %vm627_vm0, %v626_v12  ;;  %v333_v24 = vld [vmem:[%s767_s3] sm:$0xff]  ;;  %vm341_vm3 = vcmask 64512   ;;  %v335_v31 = vld [vmem:[%s767_s3 + $0x10] sm:$0xff]  ;;  %v336_v32 = vld [vmem:[%s767_s3 + $0x18] sm:$0xff]  ;;  %v628_v33 = vmov 0  }
   0xd   : > { %s219_s23 = scalar_lea.vmem %s764_s0, %s574_s20  ;;  %v699_v14 = vand.u32 127, %v225_v13  ;;  %599 = vmatprep.mubr.msk.f32.mxu1 %vm341_vm3, %v333_v24  ;;  %v257_v25 = vld [vmem:[%s766_s2] sm:$0xff]  ;;  %617 = vset.pattern.permute.xlu1 %v628_v33  ;;  %v338_v34 = vld [vmem:[%s768_s4 + $0x8] sm:$0xff]  ;;  %v340_v39 = vld [vmem:[%s768_s4 + $0x18] sm:$0xff]  ;;  %s224_s24 = scalar_lea.vmem %s769_s5, %s574_s20 }
   0xe   : > { %v675_v0 = vld [vmem:[%s219_s23 + $0x30] sm:$0xff]  ;;  %v677_v1 = vld [vmem:[%s219_s23 + $0x38] sm:$0xff]  ;;  %v679_v2 = vld [vmem:[%s219_s23 + $0x20] sm:$0xff]  ;;  %616 = vset.pattern.permute.xlu0 %v628_v33 }
   0xf   : > { %v244_v3 = vadd.f32 %v677_v1, %v675_v0  ;;  %v683_v4 = vld [vmem:[%s219_s23 + $0x28] sm:$0xff]  ;;  %v685_v5 = vld [vmem:[%s219_s23 + $0x10] sm:$0xff]  ;;  %v687_v6 = vld [vmem:[%s219_s23 + $0x18] sm:$0xff]  ;;  %vm251_vm1 = vcmp.eq.s32.totalorder %v699_v14, 0 }
  0x10   : > { %v238_v7 = vadd.f32 %v687_v6, %v685_v5  ;;  %v691_v8 = vld [vmem:[%s219_s23] sm:$0xff]  ;;  %v693_v9 = vld [vmem:[%s219_s23 + $0x8] sm:$0xff]  ;;  %v241_v10 = vadd.f32 %v683_v4, %v679_v2  ;;  %v339_v43 = vld [vmem:[%s768_s4 + $0x10] sm:$0xff] }
  0x11   : > { %245 = vadd.xlane.f32.xlu0 %v244_v3  ;;  %v235_v11 = vadd.f32 %v693_v9, %v691_v8  ;;  %v337_v36 = vld [vmem:[%s768_s4] sm:$0xff] }
  0x12   : > { %239 = vadd.xlane.f32.xlu1 %v238_v7 }
  0x15   : > { %242 = vadd.xlane.f32.xlu0 %v241_v10 }
  0x16   : > { %236 = vadd.xlane.f32.xlu1 %v235_v11 }
  0x9a   : > { %v246_v15 = vpop.xlane.xlu0 %245 }
  0x9b   : > { %v250_v16 = vmul.f32 0.00390625, %v246_v15  ;;  %v240_v17 = vpop.xlane.xlu1 %239 }
  0x9c   : > { %v248_v21 = vmul.f32 0.00390625, %v240_v17 }
  0x9d   : > { %587 = vmatpush3.msk.msra.mxu0 %vm251_vm1, %v250_v16 }
  0x9e   : > { %v243_v18 = vpop.xlane.xlu0 %242  ;;  %588 = vmatprep.subr.mxu0 %v626_v12 }
  0x9f   : > { %v249_v19 = vmul.f32 0.00390625, %v243_v18  ;;  %v237_v20 = vpop.xlane.xlu1 %236 }
  0xa0   : > { %v247_v22 = vmul.f32 0.00390625, %v237_v20 }
  0xa1   : > { %589 = vmatpush3.msk.msra.mxu0 %vm251_vm1, %v249_v19 }
  0xa2   : > { %590 = vmatprep.subr.mxu0 %v626_v12 }
  0xa3   : > { %591 = vmatpush3.msk.msra.mxu0 %vm251_vm1, %v248_v21 }
  0xa4   : > { %592 = vmatprep.subr.mxu0 %v626_v12 }
  0xa5   : > { %593 = vmatpush3.msk.msra.mxu0 %vm251_vm1, %v247_v22 }
  0xa6   : > { %595 = vmatmul.mubr.msk.f32.vlgmr.msra.gmra.mxu0 %vm258_vm2, %v256_v23 }
 0x166   : > { %v328_v26 = vpop.f32.mrf.mxu0 }
 0x167   : > { %v329_v27 = vadd.f32 %v328_v26, %v257_v25 }
 0x168   : > { %v596_v28 = vpop.f32.mrf.mxu0 }
 0x169   : > { %v332_v29 = vmax.f32 %v329_v27, 0.0 }
 0x16b   : > { %597 = vmatprep.subr.mxu1 %v332_v29 }
 0x16c   : > { %598 = vmatpush3.msra.mxu1 %v332_v29 }
 0x16d   : > { %600 = vmatmul.mubr.msk.f32.vlgmr.msra.gmra.mxu1 %vm341_vm3, %v334_v30 }
 0x16e   : > { %602 = vmatprep.mubr.msk.f32.mxu1 %vm341_vm3, %v335_v31 }
 0x171   : > { %603 = vmatmul.mubr.msk.f32.gmra.mxu1 %vm341_vm3, %v336_v32 }
 0x22d   : > { %v601_v35 = vpop.f32.mrf.mxu1 }
 0x22e   : > { %v426_v37 = vadd.f32 %v601_v35, %v338_v34 }
 0x22f   : > { %v420_v38 = vpop.f32.mrf.mxu1 }
 0x230   : > { %v440_v40 = vadd.f32 3.0, %v426_v37  ;;  %v421_v41 = vadd.f32 %v420_v38, %v337_v36 }
 0x231   : > { %v604_v42 = vpop.f32.mrf.mxu1 }
 0x232   : > { %v444_v44 = vmax.f32 %v440_v40, 0.0  ;;  %v439_v45 = vadd.f32 3.0, %v421_v41  ;;  %v436_v46 = vadd.f32 %v604_v42, %v340_v39 }
 0x233   : > { %v430_v47 = vpop.f32.mrf.mxu1 }
 0x234   : > { %v448_v48 = vmin.f32 %v444_v44, 6.0  ;;  %v443_v49 = vmax.f32 %v439_v45, 0.0  ;;  %v442_v50 = vadd.f32 3.0, %v436_v46  ;;  %v431_v51 = vadd.f32 %v430_v47, %v339_v43 }
 0x236   : > { %v452_v52 = vmul.f32 0.16666667, %v448_v48  ;;  %v447_v53 = vmin.f32 %v443_v49, 6.0  ;;  %v446_v54 = vmax.f32 %v442_v50, 0.0  ;;  %v441_v55 = vadd.f32 3.0, %v431_v51 }
 0x238   : > { %v451_v56 = vmul.f32 0.16666667, %v447_v53  ;;  %v445_v57 = vmax.f32 %v441_v55, 0.0  ;;  %v456_v58 = vsel %vm251_vm1, %v452_v52, 0.0  ;;  %v450_v59 = vmin.f32 %v446_v54, 6.0 }
 0x239   : > { %470 = vperm.xlu1 %617, %v456_v58  }
 0x23a   : > { %v449_v60 = vmin.f32 %v445_v57, 6.0  ;;  %v455_v61 = vsel %vm251_vm1, %v451_v56, 0.0  ;;  %v454_v63 = vmul.f32 0.16666667, %v450_v59 }
 0x23b   : > { %465 = vperm.xlu0 %616, %v455_v61  }
 0x23c   : > { %v453_v62 = vmul.f32 0.16666667, %v449_v60  ;;  %v458_v7 = vsel %vm251_vm1, %v454_v63, 0.0 }
 0x23e   : > { %v457_v3 = vsel %vm251_vm1, %v453_v62, 0.0 }
 0x23f   : > { %475 = vperm.xlu1 %617, %v457_v3  }
 0x243   : > { %480 = vperm.xlu1 %617, %v458_v7  }
 0x2b4   : > { %v471_v10 = vpop.permute.xlu1 %470 }
 0x2b5   : > { %v485_v11 = vmul.f32 %v471_v10, %v685_v5  ;;  %v486_v12 = vmul.f32 %v471_v10, %v687_v6 }
 0x2b6   : > { %v466_v13 = vpop.permute.xlu0 %465 }
 0x2b7   : > { %493 = vst [vmem:[%s224_s24 + $0x10] sm:$0xff] %v485_v11  ;;  %494 = vst [vmem:[%s224_s24 + $0x18] sm:$0xff] %v486_v12  ;;  %v483_v15 = vmul.f32 %v466_v13, %v691_v8  ;;  %v484_v16 = vmul.f32 %v466_v13, %v693_v9 }
 0x2b9   : > { %491 = vst [vmem:[%s224_s24] sm:$0xff] %v483_v15  ;;  %492 = vst [vmem:[%s224_s24 + $0x8] sm:$0xff] %v484_v16 }
 0x2ba   : > { %v476_v14 = vpop.permute.xlu1 %475 }
 0x2bb   : > { %v487_v17 = vmul.f32 %v476_v14, %v679_v2  ;;  %v488_v18 = vmul.f32 %v476_v14, %v683_v4 }
 0x2bd   : > { %495 = vst [vmem:[%s224_s24 + $0x20] sm:$0xff] %v487_v17  ;;  %496 = vst [vmem:[%s224_s24 + $0x28] sm:$0xff] %v488_v18 }
 0x2be   : > { %v481_v19 = vpop.permute.xlu1 %480 }
 0x2bf   : > { %v489_v5 = vmul.f32 %v481_v19, %v675_v0  ;;  %v490_v6 = vmul.f32 %v481_v19, %v677_v1 }
 0x2c1   : > { %497 = vst [vmem:[%s224_s24 + $0x30] sm:$0xff] %v489_v5  ;;  %498 = vst [vmem:[%s224_s24 + $0x38] sm:$0xff] %v490_v6 }
 0x2c2 PF: > { %s15_s18 = sadd.s32 1, %s624_s18  }
 0x2c3   : > { %p12_p4 = scmp.ge.s32.totalorder %s15_s18, 4  }
 0x2c5   :  { %14 = sbr.rel (!%p12_p4) target bundleno = 1 (0x1), region = 70 }

</bundles_post_ra>
